<compile_context>
chip_gen: v5e
topology: v5e:2x2
jax: 0.10.0
libtpu: 0.0.40
codegen_flags: <defaults>
</compile_context>

<pallas_src>
import jax
import jax.numpy as jnp
from jax.experimental import pallas as pl
from jax.experimental.pallas import tpu as pltpu


def _part_score_kernel(x_ref, w1e_ref, w2t_ref, bc_ref, o_ref):
    # x_ref:   (bt, c*p)   lane-dense batch tile
    # w1e_ref: (c*p, p//r) fused avg-pool + first 1x1-conv weight
    # w2t_ref: (p//r, p)   second 1x1-conv weight, transposed
    # bc_ref:  (p, c*p)    0/1 matrix broadcasting s back over the feature axis
    x = x_ref[...]                                                         # (bt, c*p)
    # fused adaptive-avg-pool (over features) + Conv1d(p, p//r, 1) + ReLU
    h = jnp.dot(x, w1e_ref[...], preferred_element_type=jnp.float32)      # (bt, p//r)
    h = jnp.maximum(h, 0.0)
    # Conv1d(p//r, p, 1) + Sigmoid
    z = jnp.dot(h, w2t_ref[...], preferred_element_type=jnp.float32)      # (bt, p)
    s = jax.nn.sigmoid(z)
    # broadcast s across the c copies of each part, staying lane-dense
    s_full = jnp.dot(s, bc_ref[...], preferred_element_type=jnp.float32)  # (bt, c*p)
    # out = x + x * s
    o_ref[...] = (x * (1.0 + s_full)).astype(o_ref.dtype)


def _choose_batch_tile(b, row_bytes, target_bytes=2 << 20):
    """Batch tile: sublane-aligned, ~target_bytes per buffer, >=2 grid steps."""
    if b <= 8:
        return b                      # block == full batch dim (always legal)
    bt = min(b, max(8, target_bytes // max(row_bytes, 1)))
    bt = max(8, (bt // 8) * 8)        # keep the sublane dim a multiple of 8
    if pl.cdiv(b, bt) < 2:            # leave >=2 steps for megacore sharding
        bt = max(8, ((b // 2) // 8) * 8)
    return bt


def part_score_pallas(x, w1, w2):
    """x: (b, c, p) f32; w1: (p//r, p) f32; w2: (p, p//r) f32."""
    b, c, p = x.shape
    pr = w1.shape[0]
    cp = c * p

    # Lane-dense view of x / out: row-major reshape is free.
    x2 = x.reshape(b, cp)

    # Plain-JAX glue (tiny, done once):
    #   W1_eff[k, j2] = W1[j2, k % p] / c   -> pooling folded into conv1
    #   bcast[j, k]   = (k % p == j)        -> broadcast s back over features
    lane_part = jnp.arange(cp) % p
    w1_eff = (jnp.transpose(w1)[lane_part, :] / c).astype(jnp.float32)            # (cp, pr)
    w2t = jnp.transpose(w2).astype(jnp.float32)                                   # (pr, p)
    bcast = (lane_part[None, :] == jnp.arange(p)[:, None]).astype(jnp.float32)    # (p, cp)

    bt = _choose_batch_tile(b, cp * 4)
    grid = (pl.cdiv(b, bt),)

    # Purely bandwidth-bound: tell XLA roughly what we touch.
    cost = pl.CostEstimate(
        flops=2 * b * (cp * pr + pr * p + p * cp) + 2 * b * cp,
        transcendentals=b * p,
        bytes_accessed=(2 * b * cp + cp * pr + pr * p + p * cp) * 4,
    )

    out2 = pl.pallas_call(
        _part_score_kernel,
        out_shape=jax.ShapeDtypeStruct((b, cp), x.dtype),
        grid_spec=pltpu.PrefetchScalarGridSpec(
            num_scalar_prefetch=0,
            grid=grid,
            in_specs=[
                pl.BlockSpec((bt, cp), lambda i: (i, 0)),
                # weights: constant index_map -> fetched once, resident in VMEM
                pl.BlockSpec((cp, pr), lambda i: (0, 0)),
                pl.BlockSpec((pr, p), lambda i: (0, 0)),
                pl.BlockSpec((p, cp), lambda i: (0, 0)),
            ],
            out_specs=pl.BlockSpec((bt, cp), lambda i: (i, 0)),
        ),
        compiler_params=pltpu.CompilerParams(
            dimension_semantics=("parallel",),
            vmem_limit_bytes=32 * 1024 * 1024,   # explicit; safe on v5e/v6e/v7x
        ),
        cost_estimate=cost,
    )(x2, w1_eff, w2t, bcast)

    return out2.reshape(b, c, p)


def part_score_ref(x, w1, w2):
    # pure-JAX reference of the PyTorch forward
    m = jnp.mean(x, axis=1)                              # (b, p)
    h = jnp.maximum(m @ w1.T, 0.0)                       # (b, p//r)
    s = jax.nn.sigmoid(h @ w2.T)                         # (b, p)
    return x + x * s[:, None, :]


if __name__ == "__main__":
    # small shapes: batch=2, feature channels c=32, parts p=8 (== `channel`
    # arg of the PyTorch module), reduction=2
    b, c, p, r = 2, 32, 8, 2

    key = jax.random.PRNGKey(0)
    kx, k1, k2 = jax.random.split(key, 3)
    x = jax.random.normal(kx, (b, c, p), dtype=jnp.float32)
    # Conv1d weights (out_ch, in_ch, 1) -> squeeze the kernel dim
    w1 = 0.1 * jax.random.normal(k1, (p // r, p), dtype=jnp.float32)
    w2 = 0.1 * jax.random.normal(k2, (p, p // r), dtype=jnp.float32)

    out = part_score_pallas(x, w1, w2)
    out = jax.block_until_ready(out)

    ref = part_score_ref(x, w1, w2)
    assert jnp.allclose(out, ref, atol=2e-5, rtol=2e-5), "mismatch vs reference"

    print("KERNEL_OK")
</pallas_src>

<mosaic_0001>
module attributes {stable_mosaic.version = 11 : i64} {
  func.func @_part_score_kernel(%arg0: i32, %arg1: memref<2x256xf32, #tpu.memory_space<vmem>>, %arg2: memref<256x4xf32, #tpu.memory_space<vmem>>, %arg3: memref<4x8xf32, #tpu.memory_space<vmem>>, %arg4: memref<8x256xf32, #tpu.memory_space<vmem>>, %arg5: memref<2x256xf32, #tpu.memory_space<vmem>>) attributes {dimension_semantics = [#tpu.dimension_semantics<parallel>], iteration_bounds = array<i64: 1>, scalar_prefetch = 0 : i64, scratch_operands = 0 : i64, tpu.core_type = #tpu.core_type<tc>, window_params = [{transform_indices = @transform_0, window_bounds = array<i64: 2, 256>}, {pipeline_mode = #tpu.pipeline_mode<synchronous>, transform_indices = @transform_1, window_bounds = array<i64: 256, 4>}, {pipeline_mode = #tpu.pipeline_mode<synchronous>, transform_indices = @transform_2, window_bounds = array<i64: 4, 8>}, {pipeline_mode = #tpu.pipeline_mode<synchronous>, transform_indices = @transform_3, window_bounds = array<i64: 8, 256>}, {transform_indices = @transform_4, window_bounds = array<i64: 2, 256>}]} {
    %c0 = arith.constant 0 : index
    %c0_0 = arith.constant 0 : index
    %0 = vector.load %arg1[%c0, %c0_0] : memref<2x256xf32, #tpu.memory_space<vmem>>, vector<2x256xf32>
    %c0_1 = arith.constant 0 : index
    %c0_2 = arith.constant 0 : index
    %1 = vector.load %arg2[%c0_1, %c0_2] : memref<256x4xf32, #tpu.memory_space<vmem>>, vector<256x4xf32>
    %cst = arith.constant dense<0.000000e+00> : vector<2x4xf32>
    %2 = tpu.matmul %0, %1, %cst {dimension_numbers = #tpu.dot_dimension_numbers<[1], [0], [0], [1], [0, 0, 1, 1], [], []>} : vector<2x256xf32>, vector<256x4xf32>, vector<2x4xf32> -> vector<2x4xf32>
    %cst_3 = arith.constant 0.000000e+00 : f32
    %3 = vector.broadcast %cst_3 : f32 to vector<2x4xf32>
    %4 = arith.maximumf %2, %3 : vector<2x4xf32>
    %c0_4 = arith.constant 0 : index
    %c0_5 = arith.constant 0 : index
    %5 = vector.load %arg3[%c0_4, %c0_5] : memref<4x8xf32, #tpu.memory_space<vmem>>, vector<4x8xf32>
    %cst_6 = arith.constant dense<0.000000e+00> : vector<2x8xf32>
    %6 = tpu.matmul %4, %5, %cst_6 {dimension_numbers = #tpu.dot_dimension_numbers<[1], [0], [0], [1], [0, 0, 1, 1], [], []>} : vector<2x4xf32>, vector<4x8xf32>, vector<2x8xf32> -> vector<2x8xf32>
    %7 = arith.negf %6 : vector<2x8xf32>
    %8 = math.exp %7 : vector<2x8xf32>
    %cst_7 = arith.constant 1.000000e+00 : f32
    %9 = vector.broadcast %cst_7 : f32 to vector<2x8xf32>
    %10 = arith.addf %9, %8 : vector<2x8xf32>
    %11 = arith.divf %9, %10 : vector<2x8xf32>
    %c0_8 = arith.constant 0 : index
    %c0_9 = arith.constant 0 : index
    %12 = vector.load %arg4[%c0_8, %c0_9] : memref<8x256xf32, #tpu.memory_space<vmem>>, vector<8x256xf32>
    %cst_10 = arith.constant dense<0.000000e+00> : vector<2x256xf32>
    %13 = tpu.matmul %11, %12, %cst_10 {dimension_numbers = #tpu.dot_dimension_numbers<[1], [0], [0], [1], [0, 0, 1, 1], [], []>} : vector<2x8xf32>, vector<8x256xf32>, vector<2x256xf32> -> vector<2x256xf32>
    %cst_11 = arith.constant 1.000000e+00 : f32
    %14 = vector.broadcast %cst_11 : f32 to vector<2x256xf32>
    %15 = arith.addf %14, %13 : vector<2x256xf32>
    %16 = arith.mulf %0, %15 : vector<2x256xf32>
    %c0_12 = arith.constant 0 : index
    %c0_13 = arith.constant 0 : index
    %17 = vector.load %arg5[%c0_12, %c0_13] : memref<2x256xf32, #tpu.memory_space<vmem>>, vector<2x256xf32>
    tpu.vector_store %arg5[%c0_12, %c0_13], %16 {strides = array<i32>} : memref<2x256xf32, #tpu.memory_space<vmem>>, vector<2x256xf32>,
    return
  }
  func.func @transform_0(%arg0: i32) -> (i32, i32) {
    %c0_i32 = arith.constant 0 : i32
    %c0_i32_0 = arith.constant 0 : i32
    return %arg0, %c0_i32 : i32, i32
  }
  func.func @transform_1(%arg0: i32) -> (i32, i32) {
    %c0_i32 = arith.constant 0 : i32
    %c0_i32_0 = arith.constant 0 : i32
    %c0_i32_1 = arith.constant 0 : i32
    return %c0_i32, %c0_i32_0 : i32, i32
  }
  func.func @transform_2(%arg0: i32) -> (i32, i32) {
    %c0_i32 = arith.constant 0 : i32
    %c0_i32_0 = arith.constant 0 : i32
    %c0_i32_1 = arith.constant 0 : i32
    return %c0_i32, %c0_i32_0 : i32, i32
  }
  func.func @transform_3(%arg0: i32) -> (i32, i32) {
    %c0_i32 = arith.constant 0 : i32
    %c0_i32_0 = arith.constant 0 : i32
    %c0_i32_1 = arith.constant 0 : i32
    return %c0_i32, %c0_i32_0 : i32, i32
  }
  func.func @transform_4(%arg0: i32) -> (i32, i32) {
    %c0_i32 = arith.constant 0 : i32
    %c0_i32_0 = arith.constant 0 : i32
    return %arg0, %c0_i32 : i32, i32
  }
}

</mosaic_0001>

<bundles_post_ra>
// kernel: tpu_custom_call.1
= control target key start
LH: loop header
LB: loop body
LE: loop exit
PB: predicated region body
PF: predicated region fallthrough
CT: control target
= control target key end

     0   :  { %s393_s0 = inlined_call_operand.vmem [shape: f32[2,256], index: 0, kind: input, shape index: {}]   ;;  %s394_s1 = inlined_call_operand.vmem [shape: f32[256,4], index: 1, kind: input, shape index: {}]   ;;  %s395_s2 = inlined_call_operand.vmem [shape: f32[4,8], index: 2, kind: input, shape index: {}]   ;;  %s396_s3 = inlined_call_operand.vmem [shape: f32[8,256], index: 3, kind: input, shape index: {}]   ;;  %s397_s4 = inlined_call_operand.hbm [shape: f32[2,256], index: 4, kind: output, shape index: {}]  }
   0x1   :  { %v34_v0 = vld [vmem:[%s394_s1 + $0x78] sm:$0xff]  ;;  %v33_v2 = vld [vmem:[%s394_s1 + $0x70] sm:$0xff]  ;;  %v32_v4 = vld [vmem:[%s394_s1 + $0x68] sm:$0xff] }
   0x2   :  { %v50_v1 = vld [vmem:[%s394_s1 + $0xf8] sm:$0xff]  ;;  %57 = vmatpush.msra.mxu0 %v34_v0  ;;  %v49_v3 = vld [vmem:[%s394_s1 + $0xf0] sm:$0xff]  ;;  %v48_v5 = vld [vmem:[%s394_s1 + $0xe8] sm:$0xff] }
   0x3   :  { %77 = vmatpush.msra.mxu1 %v50_v1  ;;  %v31_v6 = vld [vmem:[%s394_s1 + $0x60] sm:$0xff]  ;;  %v30_v8 = vld [vmem:[%s394_s1 + $0x58] sm:$0xff]  ;;  %v29_v10 = vld [vmem:[%s394_s1 + $0x50] sm:$0xff] }
   0x4   :  { %58 = vmatpush.msra.mxu0 %v33_v2  ;;  %v47_v7 = vld [vmem:[%s394_s1 + $0xe0] sm:$0xff]  ;;  %v46_v9 = vld [vmem:[%s394_s1 + $0xd8] sm:$0xff]  ;;  %v45_v11 = vld [vmem:[%s394_s1 + $0xd0] sm:$0xff] }
   0x5   :  { %78 = vmatpush.msra.mxu1 %v49_v3  ;;  %v28_v12 = vld [vmem:[%s394_s1 + $0x48] sm:$0xff]  ;;  %v323_v14 = vld [vmem:[%s393_s0] sm:$0xf] }
   0x6   :  { %59 = vmatpush.msra.mxu0 %v32_v4  ;;  %v44_v13 = vld [vmem:[%s394_s1 + $0xc8] sm:$0xff]  ;;  %52 = vst [vmem:[#allocation1] ss:$4 sm:$0xff] %v323_v14 }
   0x7   :  { %79 = vmatpush.msra.mxu1 %v48_v5 }
   0x8   :  { %60 = vmatpush.msra.mxu0 %v31_v6 }
   0x9   :  { %80 = vmatpush.msra.mxu1 %v47_v7 }
   0xa   :  { %61 = vmatpush.msra.mxu0 %v30_v8 }
   0xb   :  { %81 = vmatpush.msra.mxu1 %v46_v9 }
   0xc   :  { %62 = vmatpush.msra.mxu0 %v29_v10 }
   0xd   :  { %82 = vmatpush.msra.mxu1 %v45_v11 }
   0xe   :  { %9 = vsyncpa [#allocation3], 0  ;;  %v27_v15 = vld [vmem:[%s394_s1 + $0x40] sm:$0xff]  ;;  %63 = vmatpush.msra.mxu0 %v28_v12  ;;  %v26_v17 = vld [vmem:[%s394_s1 + $0x38] sm:$0xff]  ;;  %vm103_vm0 = vcmask 1043456   ;;  %vm99_vm1 = vcmask 31744  }
   0xf   :  { %v43_v16 = vld [vmem:[%s394_s1 + $0xc0] sm:$0xff]  ;;  %83 = vmatpush.msra.mxu1 %v44_v13  ;;  %v42_v18 = vld [vmem:[%s394_s1 + $0xb8] sm:$0xff]  ;;  %v25_v19 = vld [vmem:[%s394_s1 + $0x30] sm:$0xff]  ;;  %vm148_vm5 = vcmask 64512   ;;  %vm195_vm7 = vcmask 1041408   ;;  %s207_s8 = sshll.u32 %s397_s4, 4  ;;  %s208_s8 = int_to_ptr.hbm [resolvable:$true] %s207_s8 }
  0x10   :  { %64 = vmatpush.msra.mxu0 %v27_v15  ;;  %v41_v20 = vld [vmem:[%s394_s1 + $0xb0] sm:$0xff]  ;;  %v24_v21 = vld [vmem:[%s394_s1 + $0x28] sm:$0xff]  ;;  %v23_v23 = vld [vmem:[%s394_s1 + $0x20] sm:$0xff] }
  0x11   :  { %84 = vmatpush.msra.mxu1 %v43_v16  ;;  %v40_v22 = vld [vmem:[%s394_s1 + $0xa8] sm:$0xff]  ;;  %v39_v24 = vld [vmem:[%s394_s1 + $0xa0] sm:$0xff]  ;;  %v22_v25 = vld [vmem:[%s394_s1 + $0x18] sm:$0xff] }
  0x12   :  { %65 = vmatpush.msra.mxu0 %v26_v17  ;;  %v38_v26 = vld [vmem:[%s394_s1 + $0x98] sm:$0xff]  ;;  %v21_v27 = vld [vmem:[%s394_s1 + $0x10] sm:$0xff]  ;;  %v20_v29 = vld [vmem:[%s394_s1 + $0x8] sm:$0xff] }
  0x13   :  { %85 = vmatpush.msra.mxu1 %v42_v18  ;;  %v37_v28 = vld [vmem:[%s394_s1 + $0x90] sm:$0xff]  ;;  %v36_v30 = vld [vmem:[%s394_s1 + $0x88] sm:$0xff]  ;;  %v19_v31 = vld [vmem:[%s394_s1] sm:$0xff] }
  0x14   :  { %66 = vmatpush.msra.mxu0 %v25_v19  ;;  %v35_v32 = vld [vmem:[%s394_s1 + $0x80] sm:$0xff]  ;;  %v54_v34 = vld.sshfl [vmem:[#allocation1 + $0x8] sm:$0xff pattern:$0x73625140] }
  0x15   :  { %86 = vmatpush.msra.mxu1 %v41_v20  ;;  %v53_v33 = vld.sshfl [vmem:[#allocation1] sm:$0xff pattern:$0x73625140]  ;;  %v147_v40 = vld [vmem:[%s396_s3 + $0x8] sm:$0xff] }
  0x16   :  { %67 = vmatpush.msra.mxu0 %v24_v21  ;;  %v98_v35 = vld [vmem:[%s395_s2] sm:$0xf]  ;;  %s252_s2 = smov [#allocation2]  }
  0x17   :  { %87 = vmatpush.msra.mxu1 %v40_v22  ;;  %216 = vmatpush.msk.msra.mxu2 %vm103_vm0, %v98_v35  ;;  %v146_v41 = vld [vmem:[%s396_s3] sm:$0xff]  ;;  %s205_s3 = sshll.u32 %s252_s2, 4  ;;  %s206_s3 = int_to_ptr.vmem [resolvable:$true] %s205_s3 }
  0x18   :  { %68 = vmatpush.msra.mxu0 %v23_v23  ;;  %167 = vmatpush.msra.mxu3 %v146_v41 }
  0x19   :  { %88 = vmatpush.msra.mxu1 %v39_v24  ;;  %187 = vmatpush.msrb.mxu2 %v147_v40 }
  0x1a   :  { %69 = vmatpush.msra.mxu0 %v22_v25 }
  0x1b   :  { %89 = vmatpush.msra.mxu1 %v38_v26 }
  0x1c   :  { %70 = vmatpush.msra.mxu0 %v21_v27 }
  0x1d   :  { %90 = vmatpush.msra.mxu1 %v37_v28 }
  0x1e   :  { %71 = vmatpush.msra.mxu0 %v20_v29 }
  0x1f   :  { %91 = vmatpush.msra.mxu1 %v36_v30 }
  0x20   :  { %72 = vmatpush.msra.mxu0 %v19_v31 }
  0x21   :  { %92 = vmatpush.msra.mxu1 %v35_v32  ;;  %73 = vmatmul.f32.vlgmr.msra.gmra.mxu0 %v53_v33 }
  0x22   :  { %93 = vmatmul.f32.vlgmr.msra.gmra.mxu1 %v54_v34 }
  0x9e   :  { %v74_v36 = vpop.f32.mrf.mxu0 }
  0x9f   :  { %v94_v37 = vpop.f32.mrf.mxu1 }
  0xa0   :  { %v95_v38 = vadd.f32 %v94_v37, %v74_v36 }
  0xa2   :  { %v97_v39 = vmax.f32 %v95_v38, 0.0 }
  0xa4   :  { %217 = vmatmul.msk.f32.vlgmr.msra.gmra.mxu2 %vm99_vm1, %v97_v39 }
 0x127   :  { %v124_v42 = vpop.f32.mrf.mxu2 }
 0x128   :  { %v218_v43 = vmul.f32 -1.442695, %v124_v42 }
 0x12a   :  { %222 = vpow2.f32 %v218_v43 }
 0x130   :  { %v223_v44 = vpop.eup %222 }
 0x131   :  { %v130_v45 = vadd.f32 1.0, %v223_v44 }
 0x133   :  { %224 = vrcp.f32 %v130_v45  ;;  %v142_v49 = vand.u32 2147483648, %v130_v45  ;;  %v140_v51 = vand.u32 2147483647, %v130_v45  ;;  %vm136_vm3 = vweird.f32 %v130_v45 }
 0x135   :  { %v143_v53 = vor.u32 1.1754944e-38, %v142_v49  ;;  %vm141_vm6 = vcmp.eq.f32.partialorder %v140_v51, 8.507059e+37 }
 0x139   :  { %v225_v46 = vpop.eup %224 }
 0x13a   :  { %v132_v47 = vmul.f32 %v225_v46, %v130_v45  ;;  %vm137_vm2 = vweird.f32 %v225_v46 }
 0x13b   :  { %vm138_vm4 = vmor %vm136_vm3, %vm137_vm2 }
 0x13c   :  { %v133_v48 = vsub.f32 1.0, %v132_v47 }
 0x13e   :  { %v134_v50 = vmul.f32 %v225_v46, %v133_v48 }
 0x140   :  { %v135_v52 = vadd.f32 %v225_v46, %v134_v50 }
 0x142   :  { %v139_v54 = vsel %vm138_vm4, %v225_v46, %v135_v52 }
 0x143   :  { %v144_v55 = vsel %vm141_vm6, %v143_v53, %v139_v54 }
 0x144   :  { %219 = vmatmul.msk.f32.vlgmr.msra.gmra.mxu3 %vm148_vm5, %v144_v55  ;;  %220 = vmatmul.msk.f32.vlgmr.msrb.gmra.mxu2 %vm148_vm5, %v144_v55 }
 0x1c7   :  { %v169_v56 = vpop.f32.mrf.mxu3  ;;  %v189_v57 = vpop.f32.mrf.mxu2 }
 0x1c8   :  { %v190_v58 = vadd.f32 1.0, %v189_v57  ;;  %v170_v59 = vadd.f32 1.0, %v169_v56 }
 0x1ca   :  { %v194_v60 = vrot.slane %v190_v58, 6 }
 0x1cc   :  { %v196_v61 = vsel %vm195_vm7, %v170_v59, %v194_v60 }
 0x1cd   :  { %v198_v62 = vmul.f32 %v196_v61, %v323_v14 }
 0x1cf   :  { %199 = vst [vmem:[#allocation2] sm:$0xf] %v198_v62 }
 0x1d0   :  { %210 = dma.vmem_to_hbm [thread:$0]  %s206_s3, 64, %s208_s8, [#allocation3]  }
 0x1d1   :  { %250 = dma.done.wait [#allocation3], 64  }
 0x1d2   :  { %251 = vsyncadd [#allocation3], 4294967232 }
 0x1d3   :  { %215 = vsyncpa [#allocation3], 1 }

</bundles_post_ra>
